<compile_context>
chip_gen: v7x
topology: tpu7x:2x2x1
jax: 0.10.0
libtpu: 0.0.40
codegen_flags: <defaults>
</compile_context>

<pallas_src>
import jax
import jax.numpy as jnp
from jax.experimental import pallas as pl
from jax.experimental.pallas import tpu as pltpu


# -----------------------------------------------------------------------------
# Problem sizes (small, synthetic)
# -----------------------------------------------------------------------------
B = 2        # batch
C = 4        # EEG channels
T = 16       # time steps (tokens)
H = 32       # hidden dim
HFF = 64     # MLP inner dim
KA = 3       # classes for head "task_a"
KB = 5       # classes for head "task_b"
KPAD = 128   # fused-head output width padded to a full vreg lane (lane-dense store)
BPAD = 8     # output rows padded to a full sublane group (unmasked store)

# --- packed parameter slab layout: each block starts at a row multiple of 8 ----
ROW_WT = 0     # (C, H)      tokenizer weight
ROW_BT = 8     # (1, H)      tokenizer bias
ROW_W1 = 16    # (H, HFF)    encoder MLP in
ROW_B1 = 48    # (1, HFF)
ROW_W2 = 56    # (HFF, H)    encoder MLP out
ROW_B2 = 120   # (1, H)
ROW_WH = 128   # (H, KPAD)   fused heads (task_a | task_b | zero pad)
ROW_BH = 160   # (1, KPAD)
ROW_PL = 168   # (BPAD, B*T) mean-pool matrix (1/T folded in, rows >= B are zero)
SLAB_ROWS = 176
SLAB_COLS = 128


# -----------------------------------------------------------------------------
# Pallas kernel: full classifier forward for the whole batch in one invocation
# -----------------------------------------------------------------------------
def classifier_kernel(x_ref,     # (B*T, C)            time-major tokens
                      p_ref,     # (SLAB_ROWS, 128)    packed params + pool matrix
                      out_ref):  # (BPAD, KPAD)        fused, padded logits
    # Carve the resident parameter slab with static, tile-aligned row-block views.
    wt = p_ref[ROW_WT:ROW_WT + C, 0:H]           # (C, H)
    bt = p_ref[ROW_BT:ROW_BT + 1, 0:H]           # (1, H)
    w1 = p_ref[ROW_W1:ROW_W1 + H, 0:HFF]         # (H, HFF)
    b1 = p_ref[ROW_B1:ROW_B1 + 1, 0:HFF]         # (1, HFF)
    w2 = p_ref[ROW_W2:ROW_W2 + HFF, 0:H]         # (HFF, H)
    b2 = p_ref[ROW_B2:ROW_B2 + 1, 0:H]           # (1, H)
    wh = p_ref[ROW_WH:ROW_WH + H, 0:KPAD]        # (H, KPAD)
    bh = p_ref[ROW_BH:ROW_BH + 1, 0:KPAD]        # (1, KPAD)
    pool = p_ref[ROW_PL:ROW_PL + BPAD, 0:B * T]  # (BPAD, B*T), 1/T folded in

    # --- tokenizer: single canonical matmul over channels -----------------------
    tok = jnp.dot(x_ref[...], wt, preferred_element_type=jnp.float32) + bt   # (B*T, H)

    # --- encoder: MLP block with residual over the whole (B*T, H) slab ----------
    h = jnp.dot(tok, w1, preferred_element_type=jnp.float32) + b1
    h = jnp.maximum(h, 0.0)                                                  # ReLU
    h = jnp.dot(h, w2, preferred_element_type=jnp.float32) + b2
    enc = tok + h                                                            # (B*T, H)

    # --- per-sample mean pool via precomputed pooling matmul (pads batch to 8) --
    pooled = jnp.dot(pool, enc, preferred_element_type=jnp.float32)          # (BPAD, H)

    # --- fused heads: one lane-dense matmul, one unmasked (8, 128) store --------
    out_ref[...] = jnp.dot(pooled, wh, preferred_element_type=jnp.float32) + bh


# -----------------------------------------------------------------------------
# One-time parameter packing (weights, fused heads, pooling matrix -> one slab)
# -----------------------------------------------------------------------------
def pack_params(params):
    (wt, bt, w1, b1, w2, b2, wa, ba, wb, bb) = params
    slab = jnp.zeros((SLAB_ROWS, SLAB_COLS), jnp.float32)
    slab = slab.at[ROW_WT:ROW_WT + C, :H].set(wt)
    slab = slab.at[ROW_BT, :H].set(bt[0])
    slab = slab.at[ROW_W1:ROW_W1 + H, :HFF].set(w1)
    slab = slab.at[ROW_B1, :HFF].set(b1[0])
    slab = slab.at[ROW_W2:ROW_W2 + HFF, :H].set(w2)
    slab = slab.at[ROW_B2, :H].set(b2[0])
    # Fused heads: task_a in cols [0, KA), task_b in [KA, KA+KB), zeros elsewhere.
    slab = slab.at[ROW_WH:ROW_WH + H, :KA].set(wa)
    slab = slab.at[ROW_WH:ROW_WH + H, KA:KA + KB].set(wb)
    slab = slab.at[ROW_BH, :KA].set(ba[0])
    slab = slab.at[ROW_BH, KA:KA + KB].set(bb[0])
    # Mean-pool matrix with 1/T folded in; rows B..BPAD-1 stay zero (batch padding).
    pool = jnp.zeros((BPAD, B * T), jnp.float32)
    for b in range(B):
        pool = pool.at[b, b * T:(b + 1) * T].set(1.0 / T)
    slab = slab.at[ROW_PL:ROW_PL + BPAD, :B * T].set(pool)
    return slab


# -----------------------------------------------------------------------------
# Wrapper
# -----------------------------------------------------------------------------
def generic_classifier_forward(x_bct, param_slab):
    """x_bct: [B, C, T] float32 (PyTorch channels-first). Returns dict of logits."""
    # Tiny (512 B) layout fix so the in-kernel tokenizer is a canonical (M,K)x(K,N) matmul.
    x2 = jnp.transpose(x_bct.astype(jnp.float32), (0, 2, 1)).reshape(B * T, C)

    flops = (2 * (B * T) * C * H            # tokenizer
             + 2 * (B * T) * H * HFF        # MLP in
             + 2 * (B * T) * HFF * H        # MLP out
             + 2 * BPAD * (B * T) * H       # pooling matmul
             + 2 * BPAD * H * KPAD)         # fused heads
    bytes_accessed = (x2.size + SLAB_ROWS * SLAB_COLS + BPAD * KPAD) * 4

    vmem_full = pl.BlockSpec(memory_space=pltpu.MemorySpace.VMEM)

    logits = pl.pallas_call(
        classifier_kernel,
        out_shape=jax.ShapeDtypeStruct((BPAD, KPAD), jnp.float32),
        in_specs=[vmem_full, vmem_full],
        out_specs=vmem_full,
        cost_estimate=pl.CostEstimate(flops=flops,
                                      transcendentals=0,
                                      bytes_accessed=bytes_accessed),
    )(x2, param_slab)

    # Cheap glue: drop the padded rows / columns and split into the per-head dict.
    return {"task_a": logits[:B, :KA], "task_b": logits[:B, KA:KA + KB]}


# -----------------------------------------------------------------------------
# Pure-JAX reference (mirrors the original module math) for a correctness check
# -----------------------------------------------------------------------------
def reference_forward(x_bct, params):
    (wt, bt, w1, b1, w2, b2, wa, ba, wb, bb) = params
    x = jnp.transpose(x_bct, (0, 2, 1)).astype(jnp.float32)      # (B, T, C)
    tok = x @ wt + bt                                            # (B, T, H)
    h = jnp.maximum(tok @ w1 + b1, 0.0) @ w2 + b2                # (B, T, H)
    pooled = jnp.mean(tok + h, axis=1)                           # (B, H)
    return {"task_a": pooled @ wa + ba[0],
            "task_b": pooled @ wb + bb[0]}


def init_params(key):
    ks = jax.random.split(key, 6)
    scale = 0.1
    wt = scale * jax.random.normal(ks[0], (C, H), jnp.float32)
    bt = jnp.zeros((1, H), jnp.float32)
    w1 = scale * jax.random.normal(ks[1], (H, HFF), jnp.float32)
    b1 = jnp.zeros((1, HFF), jnp.float32)
    w2 = scale * jax.random.normal(ks[2], (HFF, H), jnp.float32)
    b2 = jnp.zeros((1, H), jnp.float32)
    wa = scale * jax.random.normal(ks[3], (H, KA), jnp.float32)
    ba = 0.01 * jnp.ones((1, KA), jnp.float32)
    wb = scale * jax.random.normal(ks[4], (H, KB), jnp.float32)
    bb = 0.01 * jnp.ones((1, KB), jnp.float32)
    return (wt, bt, w1, b1, w2, b2, wa, ba, wb, bb)


if __name__ == "__main__":
    key = jax.random.PRNGKey(0)
    k_x, k_p = jax.random.split(key)

    # EEG-style input: [batch, channels, time] (PyTorch channels-first layout)
    x = jax.random.normal(k_x, (B, C, T), jnp.float32)
    params = init_params(k_p)
    param_slab = pack_params(params)      # one-time parameter preprocessing

    out = generic_classifier_forward(x, param_slab)
    out = jax.tree_util.tree_map(jax.block_until_ready, out)

    ref = reference_forward(x, params)
    for name in ("task_a", "task_b"):
        assert out[name].shape == ref[name].shape, name
        assert jnp.allclose(out[name], ref[name], atol=1e-4, rtol=1e-4), name

    print("KERNEL_OK")
</pallas_src>

<mosaic_0001>
module attributes {stable_mosaic.version = 11 : i64} {
  func.func @classifier_kernel(%arg0: memref<32x4xf32, #tpu.memory_space<vmem>>, %arg1: memref<176x128xf32, #tpu.memory_space<vmem>>, %arg2: memref<8x128xf32, #tpu.memory_space<vmem>>) attributes {dimension_semantics = [], scalar_prefetch = 0 : i64, scratch_operands = 0 : i64, tpu.core_type = #tpu.core_type<tc>} {
    %c0 = arith.constant 0 : index
    %c0_0 = arith.constant 0 : index
    %0 = vector.load %arg1[%c0, %c0_0] : memref<176x128xf32, #tpu.memory_space<vmem>>, vector<4x32xf32>
    %c8 = arith.constant 8 : index
    %c0_1 = arith.constant 0 : index
    %1 = vector.load %arg1[%c8, %c0_1] : memref<176x128xf32, #tpu.memory_space<vmem>>, vector<1x32xf32>
    %c16 = arith.constant 16 : index
    %c0_2 = arith.constant 0 : index
    %2 = vector.load %arg1[%c16, %c0_2] : memref<176x128xf32, #tpu.memory_space<vmem>>, vector<32x64xf32>
    %c48 = arith.constant 48 : index
    %c0_3 = arith.constant 0 : index
    %3 = vector.load %arg1[%c48, %c0_3] : memref<176x128xf32, #tpu.memory_space<vmem>>, vector<1x64xf32>
    %c56 = arith.constant 56 : index
    %c0_4 = arith.constant 0 : index
    %4 = vector.load %arg1[%c56, %c0_4] : memref<176x128xf32, #tpu.memory_space<vmem>>, vector<64x32xf32>
    %c120 = arith.constant 120 : index
    %c0_5 = arith.constant 0 : index
    %5 = vector.load %arg1[%c120, %c0_5] : memref<176x128xf32, #tpu.memory_space<vmem>>, vector<1x32xf32>
    %c128 = arith.constant 128 : index
    %c0_6 = arith.constant 0 : index
    %6 = vector.load %arg1[%c128, %c0_6] : memref<176x128xf32, #tpu.memory_space<vmem>>, vector<32x128xf32>
    %c160 = arith.constant 160 : index
    %c0_7 = arith.constant 0 : index
    %7 = vector.load %arg1[%c160, %c0_7] : memref<176x128xf32, #tpu.memory_space<vmem>>, vector<1x128xf32>
    %c168 = arith.constant 168 : index
    %c0_8 = arith.constant 0 : index
    %8 = vector.load %arg1[%c168, %c0_8] : memref<176x128xf32, #tpu.memory_space<vmem>>, vector<8x32xf32>
    %c0_9 = arith.constant 0 : index
    %c0_10 = arith.constant 0 : index
    %9 = vector.load %arg0[%c0_9, %c0_10] : memref<32x4xf32, #tpu.memory_space<vmem>>, vector<32x4xf32>
    %cst = arith.constant dense<0.000000e+00> : vector<32x32xf32>
    %10 = tpu.matmul %9, %0, %cst {dimension_numbers = #tpu.dot_dimension_numbers<[1], [0], [0], [1], [0, 0, 1, 1], [], []>} : vector<32x4xf32>, vector<4x32xf32>, vector<32x32xf32> -> vector<32x32xf32>
    %11 = vector.broadcast %1 : vector<1x32xf32> to vector<32x32xf32>
    %12 = arith.addf %10, %11 : vector<32x32xf32>
    %cst_11 = arith.constant dense<0.000000e+00> : vector<32x64xf32>
    %13 = tpu.matmul %12, %2, %cst_11 {dimension_numbers = #tpu.dot_dimension_numbers<[1], [0], [0], [1], [0, 0, 1, 1], [], []>} : vector<32x32xf32>, vector<32x64xf32>, vector<32x64xf32> -> vector<32x64xf32>
    %14 = vector.broadcast %3 : vector<1x64xf32> to vector<32x64xf32>
    %15 = arith.addf %13, %14 : vector<32x64xf32>
    %cst_12 = arith.constant 0.000000e+00 : f32
    %16 = vector.broadcast %cst_12 : f32 to vector<32x64xf32>
    %17 = arith.maximumf %15, %16 : vector<32x64xf32>
    %cst_13 = arith.constant dense<0.000000e+00> : vector<32x32xf32>
    %18 = tpu.matmul %17, %4, %cst_13 {dimension_numbers = #tpu.dot_dimension_numbers<[1], [0], [0], [1], [0, 0, 1, 1], [], []>} : vector<32x64xf32>, vector<64x32xf32>, vector<32x32xf32> -> vector<32x32xf32>
    %19 = vector.broadcast %5 : vector<1x32xf32> to vector<32x32xf32>
    %20 = arith.addf %18, %19 : vector<32x32xf32>
    %21 = arith.addf %12, %20 : vector<32x32xf32>
    %cst_14 = arith.constant dense<0.000000e+00> : vector<8x32xf32>
    %22 = tpu.matmul %8, %21, %cst_14 {dimension_numbers = #tpu.dot_dimension_numbers<[1], [0], [0], [1], [0, 0, 1, 1], [], []>} : vector<8x32xf32>, vector<32x32xf32>, vector<8x32xf32> -> vector<8x32xf32>
    %cst_15 = arith.constant dense<0.000000e+00> : vector<8x128xf32>
    %23 = tpu.matmul %22, %6, %cst_15 {dimension_numbers = #tpu.dot_dimension_numbers<[1], [0], [0], [1], [0, 0, 1, 1], [], []>} : vector<8x32xf32>, vector<32x128xf32>, vector<8x128xf32> -> vector<8x128xf32>
    %24 = vector.broadcast %7 : vector<1x128xf32> to vector<8x128xf32>
    %25 = arith.addf %23, %24 : vector<8x128xf32>
    %c0_16 = arith.constant 0 : index
    %c0_17 = arith.constant 0 : index
    %26 = vector.load %arg2[%c0_16, %c0_17] : memref<8x128xf32, #tpu.memory_space<vmem>>, vector<8x128xf32>
    tpu.vector_store %arg2[%c0_16, %c0_17], %25 {strides = array<i32>} : memref<8x128xf32, #tpu.memory_space<vmem>>, vector<8x128xf32>,
    return
  }
}

</mosaic_0001>

<bundles_post_ra>
// kernel: tpu_custom_call.1
= control target key start
LH: loop header
LB: loop body
LE: loop exit
PB: predicated region body
PF: predicated region fallthrough
CT: control target
= control target key end

     0   :  { %7 = vsyncpa [#allocation3], 0  ;;  %s817_s0 = inlined_call_operand.vmem [shape: f32[32,4], index: 0, kind: input, shape index: {}]   ;;  %s818_s1 = inlined_call_operand.hbm [shape: f32[176,128], index: 1, kind: input, shape index: {}]   ;;  %s819_s2 = inlined_call_operand.hbm [shape: f32[8,128], index: 2, kind: output, shape index: {}]  }
   0x1   :  { %8 = vsyncpa [#allocation4], 0  ;;  %s747_s9 = smov [#allocation2]   ;;  %s699_s13 = scalar_lea.hbm %s818_s1, 2816 }
   0x2   :  { %s16_s10 = sshll.u32 %s747_s9, 4  ;;  %p700_p0 = scmp.ne.s32.totalorder %s818_s1, %s699_s13  ;;  %s17_s10 = int_to_ptr.vmem [resolvable:$true] %s16_s10 }
   0x3   :  { %p703_p1 = scmp.lt.u32.totalorder %s699_s13, %s818_s1 }
   0x5   :  { %p705_p2 = pnand %p703_p1, %p700_p0 }
   0x7   :  { %708 = shalt.err (!%p705_p2)
}
   0x8   :  { %s709_s18 = scalar_lea.vmem %s17_s10, 2816  ;;  %p714_p4 = scmp.lt.s32.totalorder %s17_s10, %s17_s10 }
   0x9   :  { %p710_p3 = scmp.ne.s32.totalorder %s17_s10, %s709_s18  ;;  %p715_p5 = scmp.lt.s32.totalorder %s709_s18, %s709_s18 }
   0xb   :  { %p716_p6 = por %p715_p5, %p714_p4 }
   0xd   :  { %p717_p7 = pnand %p716_p6, %p710_p3 }
   0xf   :  { %720 = shalt.err (!%p717_p7)
}
  0x10   :  { %s748_s19 = smov 128   ;;  %s749_s20 = smov 8  }
  0x11   :  { %22 = dma.hbm_to_vmem [thread:$0]  %s818_s1, 2816, %s17_s10, [#allocation3], %s748_s19, %s748_s19, %s749_s20  }
  0x12   :  { %743 = dma.done.wait [#allocation3], 2816  }
  0x13   :  { %744 = vsyncadd [#allocation3], 4294964480  ;;  %vm69_vm0 = vcmask 1043456   ;;  %vm56_vm1 = vcmask 31744   ;;  %v26_v0 = vld [vmem:[#allocation2] sm:$0xf] }
  0x14   :  { %v48_v1 = vld [vmem:[%s817_s0] sm:$0xff]  ;;  %v49_v2 = vld [vmem:[%s817_s0 + $0x8] sm:$0xff]  ;;  %590 = vmatprep.subr.msk.mxu0 %vm69_vm0, %v26_v0  ;;  %v50_v3 = vld [vmem:[%s817_s0 + $0x10] sm:$0xff]  ;;  %vm162_vm2 = vcmask 261120   ;;  %vm268_vm3 = vcmask 523264   ;;  %v750_v45 = vmov 0.0|0.0  }
  0x15   :  { %592 = vmatprep.mubr.msk.f32.mxu0 %vm56_vm1, %v48_v1  ;;  %v28_v4 = vld [vmem:[#allocation2 + $0x10] sm:$0xff]  ;;  %591 = vmatpush3.msk.msra.mxu0 %vm69_vm0, %v26_v0  ;;  %v29_v5 = vld [vmem:[#allocation2 + $0x18] sm:$0xff]  ;;  %v30_v8 = vld [vmem:[#allocation2 + $0x20] sm:$0xff]  ;;  %vm751_vm4 = vmmov 0   ;;  %v752_v46 = vmov 0.0  }
  0x16   :  { %593 = vmatmul.mubr.msk.f32.vlgmr.msra.gmra.mrb[0].mxu0 %vm56_vm1, %v49_v2  ;;  %v656_v6 = vpack.c.bf16 %v29_v5, %v28_v4  ;;  %v51_v7 = vld [vmem:[%s817_s0 + $0x18] sm:$0xff]  ;;  %v31_v9 = vld [vmem:[#allocation2 + $0x28] sm:$0xff]  ;;  %v34_v12 = vld [vmem:[#allocation2 + $0x40] sm:$0xff]  ;;  %s753_s0 = smov [#allocation5]  }
  0x17   :  { %595 = vmatprep.mubr.msk.f32.mxu0 %vm56_vm1, %v50_v3  ;;  %v660_v10 = vpack.c.bf16 %v31_v9, %v30_v8  ;;  %v33_v11 = vld [vmem:[#allocation2 + $0x38] sm:$0xff]  ;;  %v35_v13 = vld [vmem:[#allocation2 + $0x48] sm:$0xff]  ;;  %v36_v15 = vld [vmem:[#allocation2 + $0x50] sm:$0xff]  ;;  %s527_s30 = sshll.u32 %s753_s0, 4  ;;  %s528_s30 = int_to_ptr.vmem [resolvable:$true] %s527_s30 }
  0x18   :  { %657 = vmatprep.subr.bf16.mxu1 %v656_v6  ;;  %v664_v14 = vpack.c.bf16 %v34_v12, %v33_v11  ;;  %v668_v16 = vpack.c.bf16 %v36_v15, %v35_v13  ;;  %v37_v17 = vld [vmem:[#allocation2 + $0x58] sm:$0xff]  ;;  %v38_v18 = vld [vmem:[#allocation2 + $0x60] sm:$0xff]  ;;  %v536_v20 = vld [vmem:[#allocation2 + $0x8] ss:$0 sm:$0xff]  ;;  %s721_s3 = scalar_lea.vmem %s528_s30, 128  ;;  %p726_p9 = scmp.lt.s32.totalorder %s528_s30, %s528_s30 }
  0x19   :  { %659 = vmatpush3.bf16.msra.mxu1 %v656_v6  ;;  %v672_v19 = vpack.c.bf16 %v38_v18, %v37_v17  ;;  %v39_v29 = vld [vmem:[#allocation2 + $0x68] sm:$0xff]  ;;  %v40_v30 = vld [vmem:[#allocation2 + $0x70] sm:$0xff]  ;;  %v547_v47 = vld [vmem:[#allocation2 + $0x78] ss:$0 sm:$0xff]  ;;  %p722_p8 = scmp.ne.s32.totalorder %s528_s30, %s721_s3  ;;  %p727_p10 = scmp.lt.s32.totalorder %s721_s3, %s721_s3 }
  0x1a   :  { %596 = vmatmul.mubr.msk.f32.gmra.mrb[2].mxu0 %vm56_vm1, %v51_v7  ;;  %661 = vmatprep.subr.bf16.mxu1 %v660_v10  ;;  %v676_v31 = vpack.c.bf16 %v40_v30, %v39_v29  ;;  %v542_v32 = vld [vmem:[#allocation2 + $0x30] ss:$0 sm:$0xff]  ;;  %v42_v61 = vld [vmem:[#allocation2 + $0x80] sm:$0xff]  ;;  %v43_v62 = vld [vmem:[#allocation2 + $0x88] sm:$0xff] }
  0x1b   :  { %665 = vmatprep.subr.bf16.mxu0 %v664_v14  ;;  %v47_v0 = vld [vmem:[#allocation2 + $0xa8] sm:$0xff]  ;;  %v687_v1 = vpack.c.bf16 %v43_v62, %v42_v61  ;;  %v44_v2 = vld [vmem:[#allocation2 + $0x90] sm:$0xff]  ;;  %v45_v3 = vld [vmem:[#allocation2 + $0x98] sm:$0xff]  ;;  %p728_p11 = por %p727_p10, %p726_p9 }
  0x1c   :  { %667 = vmatpush3.bf16.msra.mxu0 %v664_v14  ;;  %v690_v4 = vpack.c.bf16 %v45_v3, %v44_v2  ;;  %v553_v7 = vld [vmem:[#allocation2 + $0xa0] ss:$0 sm:$0xff] }
  0x1d   :  { %663 = vmatpush3.bf16.msra.mxu1 %v660_v10  ;;  %669 = vmatprep.subr.bf16.mxu0 %v668_v16  ;;  %p729_p12 = pnand %p728_p11, %p722_p8 }
  0x1e   :  { %680 = vmatprep.subr.bf16.mxu1 %v750_v45 }
  0x20   :  { %671 = vmatpush3.bf16.msra.mxu0 %v668_v16 }
  0x21   :  { %673 = vmatprep.subr.bf16.mxu0 %v672_v19 }
  0x24   :  { %675 = vmatpush3.bf16.msra.mxu0 %v672_v19 }
  0x25   :  { %677 = vmatprep.subr.bf16.mxu0 %v676_v31 }
  0x28   :  { %679 = vmatpush3.bf16.msra.mxu0 %v676_v31 }
  0xe9   :  { %v594_v21 = vpop.f32.mrb[0].mxu0 }
  0xea   :  { %v139_v22 = vpop.f32.mrb[1].mxu0  ;;  %v145_v24 = vadd.f32 %v594_v21, %v536_v20 }
  0xeb   :  { %v140_v23 = vadd.f32 %v536_v20, %v139_v22 }
  0xed   :  { %v597_v25 = vpop.f32.mrb[2].mxu0  ;;  %606 = vmatprep.mubr.msk.f32.mxu1 %vm162_vm2, %v140_v23 }
  0xee   :  { %v149_v26 = vpop.f32.mrb[3].mxu0  ;;  %607 = vmatmul.mubr.msk.f32.vlgmr.msra.gmra.mrb[0].mxu1 %vm162_vm2, %v145_v24  ;;  %v155_v28 = vadd.f32 %v597_v25, %v536_v20 }
  0xef   :  { %v150_v27 = vadd.f32 %v536_v20, %v149_v26 }
  0xf1   :  { %609 = vmatprep.mubr.msk.f32.mxu1 %vm162_vm2, %v150_v27 }
  0xf2   :  { %610 = vmatmul.mubr.msk.f32.gmra.mrb[2].mxu1 %vm162_vm2, %v155_v28 }
  0xf3   :  { %642 = vmatprep.mubr.msk.f32.mxu1 %vm751_vm4, %v752_v46 }
 0x1c1   :  { %v608_v33 = vpop.f32.mrb[0].mxu1 }
 0x1c2   :  { %v247_v34 = vadd.f32 %v608_v33, %v542_v32  ;;  %v241_v35 = vpop.f32.mrb[1].mxu1 }
 0x1c3   :  { %v242_v36 = vadd.f32 %v542_v32, %v241_v35 }
 0x1c4   :  { %v261_v39 = vmax.f32 %v247_v34, 0.0 }
 0x1c5   :  { %v260_v37 = vmax.f32 %v242_v36, 0.0  ;;  %v611_v38 = vpop.f32.mrb[2].mxu1 }
 0x1c6   :  { %v257_v40 = vadd.f32 %v611_v38, %v542_v32  ;;  %v251_v41 = vpop.f32.mrb[3].mxu1 }
 0x1c7   :  { %v252_v42 = vadd.f32 %v542_v32, %v251_v41  ;;  %628 = vmatprep.mubr.msk.f32.mxu0 %vm268_vm3, %v260_v37 }
 0x1c8   :  { %629 = vmatmul.mubr.msk.f32.vlgmr.msra.gmra.mrb[4].mxu0 %vm268_vm3, %v261_v39  ;;  %v263_v44 = vmax.f32 %v257_v40, 0.0 }
 0x1c9   :  { %v262_v43 = vmax.f32 %v252_v42, 0.0 }
 0x1cb   :  { %631 = vmatprep.mubr.msk.f32.mxu0 %vm268_vm3, %v262_v43 }
 0x1cc   :  { %632 = vmatmul.mubr.msk.f32.gmra.mrb[6].mxu0 %vm268_vm3, %v263_v44 }
 0x29b   :  { %v630_v48 = vpop.f32.mrb[4].mxu0 }
 0x29c   :  { %v353_v49 = vadd.f32 %v630_v48, %v547_v47  ;;  %v347_v50 = vpop.f32.mrb[5].mxu0 }
 0x29d   :  { %v348_v51 = vadd.f32 %v547_v47, %v347_v50 }
 0x29e   :  { %v367_v52 = vadd.f32 %v353_v49, %v145_v24 }
 0x29f   :  { %v366_v53 = vadd.f32 %v348_v51, %v140_v23  ;;  %v633_v54 = vpop.f32.mrb[6].mxu0 }
 0x2a0   :  { %v363_v55 = vadd.f32 %v633_v54, %v547_v47  ;;  %v357_v56 = vpop.f32.mrb[7].mxu0 }
 0x2a1   :  { %v681_v57 = vpack.c.bf16 %v367_v52, %v366_v53  ;;  %v358_v58 = vadd.f32 %v547_v47, %v357_v56 }
 0x2a2   :  { %v369_v59 = vadd.f32 %v363_v55, %v155_v28 }
 0x2a3   :  { %v368_v60 = vadd.f32 %v358_v58, %v150_v27  ;;  %682 = vmatpush3.bf16.msra.mxu1 %v681_v57 }
 0x2a4   :  { %683 = vmatprep.subr.bf16.mxu1 %v750_v45 }
 0x2a5   :  { %v684_v63 = vpack.c.bf16 %v369_v59, %v368_v60 }
 0x2a7   :  { %685 = vmatpush3.bf16.msra.mxu1 %v684_v63 }
 0x2a8   :  { %686 = vmatprep.subr.bf16.mxu1 %v750_v45 }
 0x2aa   :  { %643 = vmatmul.mubr.msk.f32.vlgmr.msra.gmra.mrb[4].mxu1 %vm162_vm2, %v47_v0 }
 0x2ab   :  { %688 = vmatpush3.bf16.msra.mxu1 %v687_v1  ;;  %653 = vmatprep.mubr.msk.f32.mxu1 %vm751_vm4, %v752_v46 }
 0x2ac   :  { %689 = vmatprep.subr.bf16.mxu1 %v750_v45 }
 0x2af   :  { %691 = vmatpush3.bf16.msra.mxu1 %v690_v4 }
 0x37d   :  { %v439_v5 = vpop.f32.mrb[4].mxu1 }
 0x37e   :  { %v644_v6 = vpop.f32.mrb[5].mxu1  ;;  %654 = vmatmul.mubr.msk.f32.vlgmr.msra.gmra.mrb[6].mxu1 %vm162_vm2, %v439_v5 }
 0x451   :  { %v516_v8 = vpop.f32.mrb[6].mxu1 }
 0x452   :  { %v517_v9 = vadd.f32 %v553_v7, %v516_v8  ;;  %v655_v10 = vpop.f32.mrb[7].mxu1 }
 0x454   :  { %520 = vst [vmem:[#allocation5] sm:$0xff] %v517_v9 }
 0x455   :  { %732 = shalt.err (!%p729_p12)
}
 0x456   :  { %s733_s6 = scalar_lea.hbm %s819_s2, 128 }
 0x457   :  { %p734_p13 = scmp.ne.s32.totalorder %s819_s2, %s733_s6  ;;  %p737_p0 = scmp.lt.u32.totalorder %s733_s6, %s819_s2 }
 0x459   :  { %p739_p1 = pnand %p737_p0, %p734_p13 }
 0x45b   :  { %742 = shalt.err (!%p739_p1)
}
 0x45c   :  { %530 = dma.vmem_to_hbm [thread:$0]  %s528_s30, 128, %s819_s2, [#allocation4]  }
 0x45d   :  { %745 = dma.done.wait [#allocation4], 128  }
 0x45e   :  { %746 = vsyncadd [#allocation4], 4294967168 }
 0x45f   :  { %534 = vsyncpa [#allocation3], 1 }
 0x460   :  { %535 = vsyncpa [#allocation4], 1 }

</bundles_post_ra>
